<compile_context>
chip_gen: v5e
topology: v5e:2x2
jax: 0.10.0
libtpu: 0.0.40
codegen_flags: <defaults>
</compile_context>

<pallas_src>
import functools

import jax
import jax.numpy as jnp
from jax.experimental import pallas as pl
from jax.experimental.pallas import tpu as pltpu


def _round_up(x, m):
    return pl.cdiv(x, m) * m


def _linear_lrelu_kernel(x_ref, w_ref, b_ref, o_ref, *, negative_slope):
    """One row tile:  o = leaky_relu(W @ x^T + b), lane-dense (O, tile_m).

    x_ref: (tile_m, K) bf16   input rows (streamed)
    w_ref: (O, K)      bf16   weight (resident across the grid)
    b_ref: (O, 1)      f32    bias   (resident)
    o_ref: (O, tile_m) f32    output tile (rows on the lane axis)
    """
    # A @ B^T: contract K of both operands -> (O, tile_m); f32 accumulation.
    acc = jax.lax.dot_general(
        w_ref[...], x_ref[...],
        dimension_numbers=(((1,), (1,)), ((), ())),
        preferred_element_type=jnp.float32)
    acc = acc + b_ref[...]                       # bias broadcast over lanes
    # LeakyReLU(s) with 0 < s < 1 is exactly max(x, s*x): one VPU max, no select.
    acc = jnp.maximum(acc, negative_slope * acc)
    o_ref[...] = acc.astype(o_ref.dtype)


@functools.partial(jax.jit, static_argnames=("negative_slope", "tile_m"))
def linear_leaky_relu(x, w, b, *, negative_slope=0.2, tile_m=512):
    """y = leaky_relu(x @ W^T + b), matching torch.nn.Linear + nn.LeakyReLU."""
    orig_dtype = x.dtype
    *lead, K = x.shape
    O, Kw = w.shape
    assert Kw == K

    M = 1
    for d in lead:
        M *= d
    x2 = x.reshape(M, K)

    # Row tiling: multiples of 128 (lane width); clamp the tile so tiny inputs
    # do not over-pad (demo M=16 -> tile=128, a single grid step).
    tile = min(tile_m, _round_up(M, 128))
    Mpad = _round_up(M, tile)
    if Mpad != M:
        # Padded rows compute leaky_relu(bias) junk; they are sliced off below.
        x2 = jnp.pad(x2, ((0, Mpad - M), (0, 0)))

    # bf16 operands for the MXU (halves HBM bytes on the dominant x stream);
    # accumulation stays f32 inside the kernel.
    x_bf = x2.astype(jnp.bfloat16)
    w_bf = w.astype(jnp.bfloat16)
    b2 = b.astype(jnp.float32).reshape(O, 1)

    # Explicit VMEM budget (double-buffered streams + resident weight/bias),
    # with headroom, so the chosen tile also fits v7x's 64 MiB VMEM.
    lane = 128
    kpad = _round_up(K, lane)
    opad = _round_up(O, 8)
    vmem_bytes = (2 * tile * kpad * 2          # x tiles   (bf16, 2 buffers)
                  + 2 * opad * kpad * 2        # weight    (bf16)
                  + 2 * opad * lane * 4        # bias      (f32)
                  + 2 * opad * tile * 4)       # out tiles (f32, 2 buffers)
    vmem_bytes = int(vmem_bytes * 2 + (4 << 20))   # 2x slack + 4 MiB headroom

    kernel = functools.partial(_linear_lrelu_kernel,
                               negative_slope=float(negative_slope))

    out_t = pl.pallas_call(
        kernel,
        out_shape=jax.ShapeDtypeStruct((O, Mpad), jnp.float32),
        grid_spec=pltpu.PrefetchScalarGridSpec(
            num_scalar_prefetch=0,
            grid=(Mpad // tile,),
            in_specs=[
                pl.BlockSpec((tile, K), lambda i: (i, 0)),   # streamed rows
                pl.BlockSpec((O, K), lambda i: (0, 0)),      # resident weight
                pl.BlockSpec((O, 1), lambda i: (0, 0)),      # resident bias
            ],
            out_specs=pl.BlockSpec((O, tile), lambda i: (0, i)),
        ),
        compiler_params=pltpu.CompilerParams(
            dimension_semantics=("parallel",),
            vmem_limit_bytes=vmem_bytes),
    )(x_bf, w_bf, b2)

    # Single cheap layout fixup: (O, Mpad) -> (M, O) -> original leading dims.
    y = out_t[:, :M].T.reshape(*lead, O).astype(orig_dtype)
    return y


if __name__ == "__main__":
    # Module config (synthetic, deterministic init — no checkpoint load).
    in_channels, out_channels = 32, 64
    batch, seq = 2, 8

    key = jax.random.PRNGKey(0)
    kx, kw, kb = jax.random.split(key, 3)

    x = jax.random.normal(kx, (batch, seq, in_channels), dtype=jnp.float32)

    # PyTorch nn.Linear default init: U(-bound, bound), bound = 1/sqrt(fan_in)
    bound = 1.0 / (in_channels ** 0.5)
    weight = jax.random.uniform(kw, (out_channels, in_channels),
                                dtype=jnp.float32, minval=-bound, maxval=bound)
    bias = jax.random.uniform(kb, (out_channels,), dtype=jnp.float32,
                              minval=-bound, maxval=bound)

    out = linear_leaky_relu(x, weight, bias, negative_slope=0.2)
    out = jax.block_until_ready(out)

    # Pure-JAX reference in f32: leaky_relu(x @ W^T + b, 0.2)
    ref = x @ weight.T + bias
    ref = jnp.where(ref >= 0, ref, 0.2 * ref)

    assert out.shape == ref.shape == (batch, seq, out_channels)
    # bf16 MXU operands (f32 accumulation) -> loosened tolerance per review.
    assert jnp.allclose(out, ref, atol=2e-2, rtol=2e-2)
    print("KERNEL_OK")
</pallas_src>

<mosaic_0001>
module attributes {stable_mosaic.version = 11 : i64} {
  func.func @_linear_lrelu_kernel(%arg0: i32, %arg1: memref<128x32xbf16, #tpu.memory_space<vmem>>, %arg2: memref<64x32xbf16, #tpu.memory_space<vmem>>, %arg3: memref<64x1xf32, #tpu.memory_space<vmem>>, %arg4: memref<64x128xf32, #tpu.memory_space<vmem>>) attributes {dimension_semantics = [#tpu.dimension_semantics<parallel>], iteration_bounds = array<i64: 1>, scalar_prefetch = 0 : i64, scratch_operands = 0 : i64, tpu.core_type = #tpu.core_type<tc>, window_params = [{transform_indices = @transform_0, window_bounds = array<i64: 128, 32>}, {pipeline_mode = #tpu.pipeline_mode<synchronous>, transform_indices = @transform_1, window_bounds = array<i64: 64, 32>}, {pipeline_mode = #tpu.pipeline_mode<synchronous>, transform_indices = @transform_2, window_bounds = array<i64: 64, 1>}, {transform_indices = @transform_3, window_bounds = array<i64: 64, 128>}]} {
    %c0 = arith.constant 0 : index
    %c0_0 = arith.constant 0 : index
    %0 = vector.load %arg2[%c0, %c0_0] : memref<64x32xbf16, #tpu.memory_space<vmem>>, vector<64x32xbf16>
    %c0_1 = arith.constant 0 : index
    %c0_2 = arith.constant 0 : index
    %1 = vector.load %arg1[%c0_1, %c0_2] : memref<128x32xbf16, #tpu.memory_space<vmem>>, vector<128x32xbf16>
    %cst = arith.constant dense<0.000000e+00> : vector<64x128xf32>
    %2 = tpu.matmul %0, %1, %cst {dimension_numbers = #tpu.dot_dimension_numbers<[1], [1], [0], [0], [0, 0, 1, 0], [], []>} : vector<64x32xbf16>, vector<128x32xbf16>, vector<64x128xf32> -> vector<64x128xf32>
    %c0_3 = arith.constant 0 : index
    %c0_4 = arith.constant 0 : index
    %3 = vector.load %arg3[%c0_3, %c0_4] : memref<64x1xf32, #tpu.memory_space<vmem>>, vector<64x1xf32>
    %4 = vector.broadcast %3 : vector<64x1xf32> to vector<64x128xf32>
    %5 = arith.addf %2, %4 : vector<64x128xf32>
    %cst_5 = arith.constant 2.000000e-01 : f32
    %6 = vector.broadcast %cst_5 : f32 to vector<64x128xf32>
    %7 = arith.mulf %6, %5 : vector<64x128xf32>
    %8 = arith.maximumf %5, %7 : vector<64x128xf32>
    %c0_6 = arith.constant 0 : index
    %c0_7 = arith.constant 0 : index
    %9 = vector.load %arg4[%c0_6, %c0_7] : memref<64x128xf32, #tpu.memory_space<vmem>>, vector<64x128xf32>
    tpu.vector_store %arg4[%c0_6, %c0_7], %8 {strides = array<i32>} : memref<64x128xf32, #tpu.memory_space<vmem>>, vector<64x128xf32>,
    return
  }
  func.func @transform_0(%arg0: i32) -> (i32, i32) {
    %c0_i32 = arith.constant 0 : i32
    %c0_i32_0 = arith.constant 0 : i32
    return %arg0, %c0_i32 : i32, i32
  }
  func.func @transform_1(%arg0: i32) -> (i32, i32) {
    %c0_i32 = arith.constant 0 : i32
    %c0_i32_0 = arith.constant 0 : i32
    %c0_i32_1 = arith.constant 0 : i32
    return %c0_i32, %c0_i32_0 : i32, i32
  }
  func.func @transform_2(%arg0: i32) -> (i32, i32) {
    %c0_i32 = arith.constant 0 : i32
    %c0_i32_0 = arith.constant 0 : i32
    %c0_i32_1 = arith.constant 0 : i32
    return %c0_i32, %c0_i32_0 : i32, i32
  }
  func.func @transform_3(%arg0: i32) -> (i32, i32) {
    %c0_i32 = arith.constant 0 : i32
    %c0_i32_0 = arith.constant 0 : i32
    return %c0_i32, %arg0 : i32, i32
  }
}

</mosaic_0001>

<bundles_post_ra>
// kernel: linear_leaky_relu.1
= control target key start
LH: loop header
LB: loop body
LE: loop exit
PB: predicated region body
PF: predicated region fallthrough
CT: control target
= control target key end

     0   :  { %vm146_vm0 = vcmask 261120   ;;  %v332_v9 = vmov 0   ;;  %s449_s0 = inlined_call_operand.vmem [shape: bf16[128,32], index: 0, kind: input, shape index: {}]   ;;  %s450_s2 = inlined_call_operand.vmem [shape: f32[64,1], index: 2, kind: input, shape index: {}]   ;;  %s451_s1 = inlined_call_operand.vmem [shape: bf16[64,32], index: 1, kind: input, shape index: {}]   ;;  %s452_s3 = inlined_call_operand.vmem [shape: f32[64,128], index: 3, kind: output, shape index: {}]  }
   0x1   :  { %v303_v0 = vld [vmem:[%s449_s0 + $0x38] sm:$0xff]  ;;  %v302_v2 = vld [vmem:[%s449_s0 + $0x30] sm:$0xff]  ;;  %v301_v4 = vld [vmem:[%s449_s0 + $0x28] sm:$0xff]  ;;  %330 = vset.pattern.permute.xlu1 %v332_v9  ;;  %329 = vset.pattern.permute.xlu0 %v332_v9 }
   0x2   :  { %v181_v1 = vsel %vm146_vm0, %v303_v0, 0  ;;  %v178_v3 = vsel %vm146_vm0, %v302_v2, 0  ;;  %v175_v5 = vsel %vm146_vm0, %v301_v4, 0  ;;  %v300_v6 = vld [vmem:[%s449_s0 + $0x20] sm:$0xff]  ;;  %v40_v7 = vld [vmem:[%s450_s2 + $0x10] sm:$0xff]  ;;  %331 = vset.pattern.permute.xlu2 %v332_v9  ;;  %v299_v11 = vld [vmem:[%s449_s0 + $0x18] sm:$0xff] }
   0x3   :  { %183 = vmatpush.bf16.xpose.msra.mxu0 %v181_v1  ;;  %304 = vmatpush.bf16.xpose.msra.mxu1 %v181_v1  ;;  %v38_v8 = vld [vmem:[%s450_s2] sm:$0xff]  ;;  %v172_v10 = vsel %vm146_vm0, %v300_v6, 0  ;;  %v169_v12 = vsel %vm146_vm0, %v299_v11, 0  ;;  %v41_v13 = vld [vmem:[%s450_s2 + $0x18] sm:$0xff]  ;;  %v39_v14 = vld [vmem:[%s450_s2 + $0x8] sm:$0xff] }
   0x4   :  { %305 = vmatpush.bf16.xpose.msra.mxu2 %v181_v1  ;;  %306 = vmatpush.bf16.xpose.msra.mxu3 %v181_v1  ;;  %v298_v15 = vld [vmem:[%s449_s0 + $0x10] sm:$0xff]  ;;  %v42_v16 = vld [vmem:[%s450_s2 + $0x20] sm:$0xff]  ;;  %v45_v18 = vld [vmem:[%s450_s2 + $0x38] sm:$0xff] }
   0x5   :  { %58 = vperm.xlu1 %330, %v40_v7   ;;  %48 = vperm.xlu0 %329, %v38_v8   ;;  %v166_v17 = vsel %vm146_vm0, %v298_v15, 0  ;;  %v44_v19 = vld [vmem:[%s450_s2 + $0x30] sm:$0xff]  ;;  %v43_v20 = vld [vmem:[%s450_s2 + $0x28] sm:$0xff]  ;;  %v296_v23 = vld [vmem:[%s449_s0] sm:$0xff] }
   0x6   :  { %68 = vperm.xlu2 %331, %v42_v16   ;;  %v297_v21 = vld [vmem:[%s449_s0 + $0x8] sm:$0xff]  ;;  %v160_v24 = vsel %vm146_vm0, %v296_v23, 0  ;;  %v292_v25 = vld [vmem:[%s451_s1] sm:$0xff]  ;;  %v294_v27 = vld [vmem:[%s451_s1 + $0x10] sm:$0xff] }
   0x7   :  { %v163_v22 = vsel %vm146_vm0, %v297_v21, 0  ;;  %v293_v26 = vld [vmem:[%s451_s1 + $0x8] sm:$0xff]  ;;  %v295_v28 = vld [vmem:[%s451_s1 + $0x18] sm:$0xff] }
   0xb   :  { %184 = vmatpush.bf16.xpose.msra.mxu0 %v178_v3  ;;  %307 = vmatpush.bf16.xpose.msra.mxu1 %v178_v3 }
   0xc   :  { %308 = vmatpush.bf16.xpose.msra.mxu2 %v178_v3  ;;  %309 = vmatpush.bf16.xpose.msra.mxu3 %v178_v3 }
   0xd   :  { %63 = vperm.xlu1 %330, %v41_v13   ;;  %53 = vperm.xlu0 %329, %v39_v14  }
   0xe   :  { %73 = vperm.xlu2 %331, %v43_v20  }
  0x13   :  { %185 = vmatpush.bf16.xpose.msra.mxu0 %v175_v5  ;;  %310 = vmatpush.bf16.xpose.msra.mxu1 %v175_v5 }
  0x14   :  { %311 = vmatpush.bf16.xpose.msra.mxu2 %v175_v5  ;;  %312 = vmatpush.bf16.xpose.msra.mxu3 %v175_v5 }
  0x15   :  { %83 = vperm.xlu1 %330, %v45_v18   ;;  %78 = vperm.xlu0 %329, %v44_v19  }
  0x1b   :  { %186 = vmatpush.bf16.xpose.msra.mxu0 %v172_v10  ;;  %313 = vmatpush.bf16.xpose.msra.mxu1 %v172_v10 }
  0x1c   :  { %314 = vmatpush.bf16.xpose.msra.mxu2 %v172_v10  ;;  %315 = vmatpush.bf16.xpose.msra.mxu3 %v172_v10 }
  0x23   :  { %187 = vmatpush.bf16.xpose.msra.mxu0 %v169_v12  ;;  %316 = vmatpush.bf16.xpose.msra.mxu1 %v169_v12 }
  0x24   :  { %317 = vmatpush.bf16.xpose.msra.mxu2 %v169_v12  ;;  %318 = vmatpush.bf16.xpose.msra.mxu3 %v169_v12 }
  0x2b   :  { %188 = vmatpush.bf16.xpose.msra.mxu0 %v166_v17  ;;  %319 = vmatpush.bf16.xpose.msra.mxu1 %v166_v17 }
  0x2c   :  { %320 = vmatpush.bf16.xpose.msra.mxu2 %v166_v17  ;;  %321 = vmatpush.bf16.xpose.msra.mxu3 %v166_v17 }
  0x33   :  { %189 = vmatpush.bf16.xpose.msra.mxu0 %v163_v22  ;;  %322 = vmatpush.bf16.xpose.msra.mxu1 %v163_v22 }
  0x34   :  { %323 = vmatpush.bf16.xpose.msra.mxu2 %v163_v22  ;;  %324 = vmatpush.bf16.xpose.msra.mxu3 %v163_v22 }
  0x3b   :  { %190 = vmatpush.bf16.xpose.msra.mxu0 %v160_v24  ;;  %325 = vmatpush.bf16.xpose.msra.mxu1 %v160_v24 }
  0x3c   :  { %326 = vmatpush.bf16.xpose.msra.mxu2 %v160_v24  ;;  %327 = vmatpush.bf16.xpose.msra.mxu3 %v160_v24 }
  0x42   :  { %288 = vmatmul.msk.bf16.vlgmr.msra.gmra.mxu0 %vm146_vm0, %v292_v25  ;;  %289 = vmatmul.msk.bf16.vlgmr.msra.gmra.mxu1 %vm146_vm0, %v293_v26 }
  0x43   :  { %290 = vmatmul.msk.bf16.vlgmr.msra.gmra.mxu2 %vm146_vm0, %v294_v27  ;;  %291 = vmatmul.msk.bf16.vlgmr.msra.gmra.mxu3 %vm146_vm0, %v295_v28 }
  0x60   :  { %v69_v39 = vpop.permute.xlu2 %68 }
  0x68   :  { %v74_v60 = vpop.permute.xlu2 %73 }
  0x77   :  { %v49_v29 = vpop.permute.xlu0 %48  ;;  %v59_v30 = vpop.permute.xlu1 %58 }
  0x7f   :  { %v54_v31 = vpop.permute.xlu0 %53  ;;  %v64_v38 = vpop.permute.xlu1 %63 }
  0x87   :  { %v79_v42 = vpop.permute.xlu0 %78  ;;  %v84_v59 = vpop.permute.xlu1 %83 }
  0xbf   :  { %v192_v32 = vpop.f32.mrf.mxu0  ;;  %v197_v33 = vpop.f32.mrf.mxu1 }
  0xc0   :  { %v193_v34 = vadd.f32 %v192_v32, %v49_v29  ;;  %v198_v35 = vadd.f32 %v197_v33, %v59_v30 }
  0xc2   :  { %v212_v36 = vmul.f32 0.2, %v193_v34  ;;  %v214_v37 = vmul.f32 0.2, %v198_v35 }
  0xc4   :  { %v220_v40 = vmax.f32 %v193_v34, %v212_v36  ;;  %v222_v41 = vmax.f32 %v198_v35, %v214_v37 }
  0xc6   :  { %228 = vst [vmem:[%s452_s3] sm:$0xff] %v220_v40  ;;  %v202_v43 = vpop.f32.mrf.mxu2  ;;  %v207_v44 = vpop.f32.mrf.mxu3 }
  0xc7   :  { %230 = vst [vmem:[%s452_s3 + $0x10] sm:$0xff] %v222_v41  ;;  %v203_v45 = vadd.f32 %v202_v43, %v69_v39  ;;  %v208_v46 = vadd.f32 %v207_v44, %v79_v42  ;;  %v194_v47 = vpop.f32.mrf.mxu0  ;;  %v199_v48 = vpop.f32.mrf.mxu1 }
  0xc8   :  { %v195_v49 = vadd.f32 %v194_v47, %v54_v31  ;;  %v200_v50 = vadd.f32 %v199_v48, %v64_v38 }
  0xc9   :  { %v216_v51 = vmul.f32 0.2, %v203_v45  ;;  %v218_v52 = vmul.f32 0.2, %v208_v46 }
  0xca   :  { %v213_v53 = vmul.f32 0.2, %v195_v49  ;;  %v215_v54 = vmul.f32 0.2, %v200_v50 }
  0xcb   :  { %v224_v55 = vmax.f32 %v203_v45, %v216_v51  ;;  %v226_v56 = vmax.f32 %v208_v46, %v218_v52 }
  0xcc   :  { %v221_v57 = vmax.f32 %v195_v49, %v213_v53  ;;  %v223_v58 = vmax.f32 %v200_v50, %v215_v54 }
  0xcd   :  { %232 = vst [vmem:[%s452_s3 + $0x20] sm:$0xff] %v224_v55 }
  0xce   :  { %234 = vst [vmem:[%s452_s3 + $0x30] sm:$0xff] %v226_v56  ;;  %v204_v61 = vpop.f32.mrf.mxu2  ;;  %v209_v62 = vpop.f32.mrf.mxu3 }
  0xcf   :  { %229 = vst [vmem:[%s452_s3 + $0x8] sm:$0xff] %v221_v57  ;;  %v205_v63 = vadd.f32 %v204_v61, %v74_v60  ;;  %v210_v0 = vadd.f32 %v209_v62, %v84_v59 }
  0xd0   :  { %231 = vst [vmem:[%s452_s3 + $0x18] sm:$0xff] %v223_v58 }
  0xd1   :  { %v217_v1 = vmul.f32 0.2, %v205_v63  ;;  %v219_v2 = vmul.f32 0.2, %v210_v0 }
  0xd3   :  { %v225_v3 = vmax.f32 %v205_v63, %v217_v1  ;;  %v227_v4 = vmax.f32 %v210_v0, %v219_v2 }
  0xd5   :  { %233 = vst [vmem:[%s452_s3 + $0x28] sm:$0xff] %v225_v3 }
  0xd6   :  { %235 = vst [vmem:[%s452_s3 + $0x38] sm:$0xff] %v227_v4 }

</bundles_post_ra>
